<compile_context>
chip_gen: v6e
topology: v6e:2x2x1
jax: 0.10.0
libtpu: 0.0.40
codegen_flags: <defaults>
</compile_context>

<pallas_src>
import functools
from math import sqrt

import jax
import jax.numpy as jnp
import numpy as np
from jax.experimental import pallas as pl
from jax.experimental.pallas import tpu as pltpu


def _round_up(x, m):
    return ((x + m - 1) // m) * m


def _pick_tile(padded, target, align):
    """Largest multiple of `align` that divides `padded` and is <= target."""
    if padded <= target:
        return padded
    t = (target // align) * align
    while t > align:
        if padded % t == 0:
            return t
        t -= align
    return align  # always divides: padded is a multiple of align


# --------------------------------------------------------------------------- kernels
def _concat_scorer_kernel(t_ref, s_ref, out_ref):
    # t_ref: (1, tq, 1)  = tanh(q@W2) · (v[:H]/scale)   (per-query term)
    # s_ref: (1, 1, ts)  = tanh(k@W1) · (v[H:]/scale)   (per-key term)
    # out_ref: (1, tq, ts)
    # Pure broadcast-add: the tile is bound only by the HBM output write.
    out_ref[0] = (t_ref[0] + s_ref[0]).astype(out_ref.dtype)


def _elementwise_scorer_kernel(x1t_ref, x2t_ref, v_ref, out_ref, *,
                               op: str, h_chunk: int, tanh_dtype):
    # x1t_ref: (H, tq)  query projection, H on sublanes, T lane-dense (pre-transposed)
    # x2t_ref: (H, ts)  keys  projection, H on sublanes, S lane-dense (pre-transposed)
    # v_ref:   SMEM (H,)  v / scale
    # out_ref: (1, tq, ts)
    H, tq = x1t_ref.shape
    ts = x2t_ref.shape[1]
    n_chunks = H // h_chunk

    def chunk_body(c, acc):
        c0 = pl.multiple_of(c * h_chunk, h_chunk)
        a = x1t_ref[pl.ds(c0, h_chunk), :]               # (hc, tq) sublane-aligned slice
        b = x2t_ref[pl.ds(c0, h_chunk), :]               # (hc, ts)
        at = a.T.astype(tanh_dtype)                      # (tq, hc): one tiny XLU transpose / chunk
        bt = b.astype(tanh_dtype)
        for i in range(h_chunk):                         # small fixed unroll
            col = at[:, i:i + 1]                         # (tq, 1)
            row = bt[i:i + 1, :]                         # (1, ts)
            comb = col + row if op == "add" else col * row
            # EUP tanh is the binding unit; v is a cheap SMEM scalar; acc stays f32.
            acc = acc + jnp.tanh(comb).astype(jnp.float32) * v_ref[c0 + i]
        return acc

    acc = jax.lax.fori_loop(0, n_chunks, chunk_body,
                            jnp.zeros((tq, ts), jnp.float32))
    out_ref[0] = acc.astype(out_ref.dtype)


# --------------------------------------------------------------------------- wrapper
def operation_scorer(query, keys, W1, W2, v, *, op="concat", scaled=True,
                     concat_tile=(512, 512), em_tile=(128, 128), h_chunk=8,
                     tanh_dtype=jnp.float32, mxu_dtype=None):
    """query: (B, T, M), keys: (B, S, N) -> scores (B, T, S).

    tanh_dtype=jnp.bfloat16 (v6e/v7x) halves the EUP cost on the add/mul path.
    mxu_dtype=jnp.bfloat16 casts the prologue projection inputs for ~2x MXU throughput.
    """
    assert op in ("concat", "add", "mul")
    B, T, M = query.shape
    Bk, S, N = keys.shape
    assert B == Bk
    H = W1.shape[1]
    assert W1.shape == (N, H) and W2.shape == (M, H)
    assert v.shape[0] == (2 * H if op == "concat" else H)

    # scale(max(*W1.shape, *W2.shape)), folded into v once (O(H), not per tile).
    hidden = max(N, H, M)
    inv = (1.0 / sqrt(hidden)) if scaled else 1.0
    out_dtype = query.dtype  # TODO(synk): confirm bf16 score storage is OK downstream.

    if mxu_dtype is not None:
        query, keys = query.astype(mxu_dtype), keys.astype(mxu_dtype)
        W1, W2 = W1.astype(mxu_dtype), W2.astype(mxu_dtype)

    compiler_params = pltpu.CompilerParams(
        dimension_semantics=("parallel", "parallel", "parallel"))

    if op == "concat":
        # ---- prologue (hoisted, runs once): exact rank-1 factorization -------------
        v1 = (v[:H] * inv).astype(jnp.float32)
        v2 = (v[H:] * inv).astype(jnp.float32)
        x1 = jnp.einsum("btm,mh->bth", query, W2, preferred_element_type=jnp.float32)
        x2 = jnp.einsum("bsn,nh->bsh", keys, W1, preferred_element_type=jnp.float32)
        t_col = jnp.einsum("bth,h->bt", jnp.tanh(x1), v1)          # (B, T)
        s_row = jnp.einsum("bsh,h->bs", jnp.tanh(x2), v2)          # (B, S)

        tgt_tq, tgt_ts = concat_tile
        T_pad = _round_up(T, 8)
        tq = _pick_tile(T_pad, tgt_tq, 8)
        S_pad = _round_up(S, 128)                                  # lane-dense stores
        ts = _pick_tile(S_pad, tgt_ts, 128)

        t_col = jnp.pad(t_col, ((0, 0), (0, T_pad - T)))[:, :, None]   # (B, T_pad, 1)
        s_row = jnp.pad(s_row, ((0, 0), (0, S_pad - S)))[:, None, :]   # (B, 1, S_pad)

        out = pl.pallas_call(
            _concat_scorer_kernel,
            out_shape=jax.ShapeDtypeStruct((B, T_pad, S_pad), out_dtype),
            grid_spec=pltpu.PrefetchScalarGridSpec(
                num_scalar_prefetch=0,
                grid=(B, T_pad // tq, S_pad // ts),
                in_specs=[
                    pl.BlockSpec((1, tq, 1), lambda b, ti, si: (b, ti, 0)),
                    pl.BlockSpec((1, 1, ts), lambda b, ti, si: (b, 0, si)),
                ],
                out_specs=pl.BlockSpec((1, tq, ts), lambda b, ti, si: (b, ti, si)),
            ),
            compiler_params=compiler_params,
        )(t_col, s_row)
        return out[:, :T, :S]

    # ---- op in {'add', 'mul'} -----------------------------------------------------
    H_pad = _round_up(H, h_chunk)
    v_scaled = jnp.pad((v * inv).astype(jnp.float32), (0, H_pad - H))

    tgt_tq, tgt_ts = em_tile
    if T >= 128:
        T_pad = _round_up(T, 128)            # T is lane-dense in X1T -> 128-aligned tiles
        tq = _pick_tile(T_pad, tgt_tq, 128)
    else:
        T_pad = _round_up(T, 8)
        tq = T_pad                           # single full-extent (<128) lane block
    S_pad = _round_up(S, 128)
    ts = _pick_tile(S_pad, tgt_ts, 128)

    # Prologue (hoisted, runs once): projections produced already transposed so the
    # kernel never does a (tile x H) XLU transpose.
    x1t = jnp.einsum("btm,mh->bht", query, W2, preferred_element_type=jnp.float32)
    x2t = jnp.einsum("bsn,nh->bhs", keys, W1, preferred_element_type=jnp.float32)
    x1t = jnp.pad(x1t, ((0, 0), (0, H_pad - H), (0, T_pad - T)))   # (B, H_pad, T_pad)
    x2t = jnp.pad(x2t, ((0, 0), (0, H_pad - H), (0, S_pad - S)))   # (B, H_pad, S_pad)

    kernel = functools.partial(_elementwise_scorer_kernel, op=op,
                               h_chunk=h_chunk, tanh_dtype=tanh_dtype)
    out = pl.pallas_call(
        kernel,
        out_shape=jax.ShapeDtypeStruct((B, T_pad, S_pad), out_dtype),
        grid_spec=pltpu.PrefetchScalarGridSpec(
            num_scalar_prefetch=0,
            grid=(B, T_pad // tq, S_pad // ts),
            in_specs=[
                pl.BlockSpec((pl.Squeezed(), H_pad, tq), lambda b, ti, si: (b, 0, ti)),
                pl.BlockSpec((pl.Squeezed(), H_pad, ts), lambda b, ti, si: (b, 0, si)),
                pl.BlockSpec(memory_space=pltpu.MemorySpace.SMEM),
            ],
            out_specs=pl.BlockSpec((1, tq, ts), lambda b, ti, si: (b, ti, si)),
        ),
        compiler_params=compiler_params,
    )(x1t, x2t, v_scaled)
    return out[:, :T, :S]


# --------------------------------------------------------------------------- reference
def _reference(query, keys, W1, W2, v, *, op="concat", scaled=True):
    hidden = max(W1.shape[0], W1.shape[1], W2.shape[0], W2.shape[1])
    scale = sqrt(hidden) if scaled else 1.0
    x1 = jnp.einsum("btm,mh->bth", query, W2)
    x2 = jnp.einsum("bsn,nh->bsh", keys, W1)
    x1b = x1[:, :, None, :]
    x2b = x2[:, None, :, :]
    if op == "add":
        comb = x1b + x2b
    elif op == "mul":
        comb = x1b * x2b
    else:
        B, T, _, H = x1b.shape
        S = x2b.shape[2]
        comb = jnp.concatenate([jnp.broadcast_to(x1b, (B, T, S, H)),
                                jnp.broadcast_to(x2b, (B, T, S, H))], axis=-1)
    score = jnp.sum(jnp.tanh(comb) * v, axis=-1)
    return score / scale


if __name__ == "__main__":
    B, T, S = 2, 8, 8
    query_size, key_size, attn_hidden_size = 32, 32, 32

    key = jax.random.PRNGKey(0)
    k_q, k_k, k_w1, k_w2, k_v = jax.random.split(key, 5)

    query = jax.random.normal(k_q, (B, T, query_size), dtype=jnp.float32)
    keys = jax.random.normal(k_k, (B, S, key_size), dtype=jnp.float32)
    W1 = jax.random.normal(k_w1, (key_size, attn_hidden_size), dtype=jnp.float32)
    W2 = jax.random.normal(k_w2, (query_size, attn_hidden_size), dtype=jnp.float32)

    for op in ("concat", "add", "mul"):
        C = 2 * attn_hidden_size if op == "concat" else attn_hidden_size
        v = jax.random.normal(k_v, (C,), dtype=jnp.float32)

        out = operation_scorer(query, keys, W1, W2, v, op=op, scaled=True)
        out = jax.block_until_ready(out)

        ref = _reference(query, keys, W1, W2, v, op=op, scaled=True)
        # Kernel re-associates the H reduction (exact) and uses f32 MXU/EUP paths;
        # not bit-identical to the reference but well within 1e-4.
        np.testing.assert_allclose(np.asarray(out), np.asarray(ref),
                                   rtol=1e-4, atol=1e-4)

    print("KERNEL_OK")
</pallas_src>

<mosaic_0001>
module attributes {stable_mosaic.version = 11 : i64} {
  func.func @_concat_scorer_kernel(%arg0: i32, %arg1: i32, %arg2: i32, %arg3: memref<1x8x1xf32, #tpu.memory_space<vmem>>, %arg4: memref<1x1x128xf32, #tpu.memory_space<vmem>>, %arg5: memref<1x8x128xf32, #tpu.memory_space<vmem>>) attributes {dimension_semantics = [#tpu.dimension_semantics<parallel>, #tpu.dimension_semantics<parallel>, #tpu.dimension_semantics<parallel>], iteration_bounds = array<i64: 2, 1, 1>, scalar_prefetch = 0 : i64, scratch_operands = 0 : i64, tpu.core_type = #tpu.core_type<tc>, window_params = [{transform_indices = @transform_0, window_bounds = array<i64: 1, 8, 1>}, {transform_indices = @transform_1, window_bounds = array<i64: 1, 1, 128>}, {transform_indices = @transform_2, window_bounds = array<i64: 1, 8, 128>}]} {
    %c0 = arith.constant 0 : index
    %c0_0 = arith.constant 0 : index
    %c0_1 = arith.constant 0 : index
    %0 = vector.load %arg3[%c0, %c0_0, %c0_1] : memref<1x8x1xf32, #tpu.memory_space<vmem>>, vector<1x8x1xf32>
    %1 = vector.shape_cast %0 : vector<1x8x1xf32> to vector<8x1xf32>
    %c0_2 = arith.constant 0 : index
    %c0_3 = arith.constant 0 : index
    %c0_4 = arith.constant 0 : index
    %2 = vector.load %arg4[%c0_2, %c0_3, %c0_4] : memref<1x1x128xf32, #tpu.memory_space<vmem>>, vector<1x1x128xf32>
    %3 = vector.shape_cast %2 : vector<1x1x128xf32> to vector<1x128xf32>
    %4 = vector.broadcast %1 : vector<8x1xf32> to vector<8x128xf32>
    %5 = vector.broadcast %3 : vector<1x128xf32> to vector<8x128xf32>
    %6 = arith.addf %4, %5 : vector<8x128xf32>
    %c0_5 = arith.constant 0 : index
    %c0_6 = arith.constant 0 : index
    %c0_7 = arith.constant 0 : index
    %7 = vector.load %arg5[%c0_5, %c0_6, %c0_7] : memref<1x8x128xf32, #tpu.memory_space<vmem>>, vector<1x8x128xf32>
    %8 = vector.shape_cast %7 : vector<1x8x128xf32> to vector<8x128xf32>
    %9 = vector.shape_cast %6 : vector<8x128xf32> to vector<1x8x128xf32>
    tpu.vector_store %arg5[%c0_5, %c0_6, %c0_7], %9 {strides = array<i32>} : memref<1x8x128xf32, #tpu.memory_space<vmem>>, vector<1x8x128xf32>,
    return
  }
  func.func @transform_0(%arg0: i32, %arg1: i32, %arg2: i32) -> (i32, i32, i32) {
    %c0_i32 = arith.constant 0 : i32
    %c0_i32_0 = arith.constant 0 : i32
    return %arg0, %arg1, %c0_i32 : i32, i32, i32
  }
  func.func @transform_1(%arg0: i32, %arg1: i32, %arg2: i32) -> (i32, i32, i32) {
    %c0_i32 = arith.constant 0 : i32
    %c0_i32_0 = arith.constant 0 : i32
    return %arg0, %c0_i32, %arg2 : i32, i32, i32
  }
  func.func @transform_2(%arg0: i32, %arg1: i32, %arg2: i32) -> (i32, i32, i32) {
    %c0_i32 = arith.constant 0 : i32
    return %arg0, %arg1, %arg2 : i32, i32, i32
  }
}

</mosaic_0001>

<bundles_post_ra>
// kernel: tpu_custom_call.1
= control target key start
LH: loop header
LB: loop body
LE: loop exit
PB: predicated region body
PF: predicated region fallthrough
CT: control target
= control target key end

     0   :  { %7 = vsyncpa [#allocation3], 0  ;;  %s582_s0 = inlined_call_operand.vmem [shape: f32[2,8,1], index: 0, kind: input, shape index: {}]   ;;  %s583_s1 = inlined_call_operand.vmem [shape: f32[2,1,128], index: 1, kind: input, shape index: {}]   ;;  %s584_s2 = inlined_call_operand.hbm [shape: f32[2,8,128], index: 2, kind: output, shape index: {}]  }
   0x1   :  { %9 = vsyncpa [#allocation3 + $0x1], 0  ;;  %s480_s9 = smov 0   ;;  %s482_s10 = smov 0  }
   0x2   :  { %s484_s11 = smov 0   ;;  %s486_s12 = smov 0  }
   0x3   :  { %s488_s13 = smov 0   ;;  %s490_s14 = smov 0  }
   0x4 LB: > { %s316_s15 = sadd.s32 4294967295, %s461_s14   ;;  %s317_s16 = sadd.s32 4294967294, %s461_s14   ;;  %s461_s14 = sphi %s490_s14, %s15_s14   ;;  %s457_s13 = sphi %s488_s13, %s591_s13   ;;  %s453_s12 = sphi %s486_s12, %s590_s12   ;;  %s449_s11 = sphi %s484_s11, %s589_s11   ;;  %s445_s10 = sphi %s482_s10, %s588_s10   ;;  %s441_s9 = sphi %s480_s9, %s587_s9  }
   0x5   : > { %s34_s17 = sadd.s32 1, %s457_s13  ;;  %s101_s18 = sadd.s32 1, %s449_s11 }
   0x6   : > { %p36_p0 = scmp.ge.s32.totalorder %s34_s17, 2  ;;  %p111_p1 = scmp.ne.s32.totalorder %s449_s11, %s445_s10 }
   0x7   : > { %p112_p2 = scmp.eq.s32.totalorder %s316_s15, 1  ;;  %p117_p3 = scmp.ne.s32.totalorder %s445_s10, %s441_s9 }
   0x8   : > { %s593_s17 = smov (%p36_p0, %s34_s17), 0  ;;  %p118_p5 = scmp.eq.s32.totalorder %s317_s16, 1 }
   0x9   : > { %p520_p4 = por %p112_p2, %p111_p1  ;;  %s94_s20 = ssub.s32 %s457_s13, %s593_s17 }
   0xa   : > { %p320_p6 = scmp.ge.s32.totalorder %s461_s14, 1  ;;  %p99_p7 = scmp.eq.s32.totalorder %s94_s20, 0 }
   0xb   : > { %p527_p8 = por %p118_p5, %p117_p3  ;;  %p155_p9 = scmp.lt.s32.totalorder %s461_s14, 3 }
   0xc   : > { %s533_s22 = scalar_select %p99_p7, %s449_s11, %s101_s18  }
   0xd   : > { %p156_p10 = pnand %p320_p6, %p155_p9 }
   0xe   : > { %p185_p11 = scmp.lt.s32.totalorder (!%p156_p10), %s453_s12, 1  ;;  %s182_s28 = sand.u32 (!%p156_p10), 1, %s445_s10  }
   0xf   : > { %159 = sbr.rel (%p156_p10) target bundleno = 164 (0xa4), region = 28  ;;  %s321_s29 = sshll.u32 (!%p156_p10), %s182_s28, 3 }
  0x10   : > { %s325_s5 = sshll.u32 (!%p156_p10), %s453_s12, 7  ;;  %s184_s6 = scalar_lea.vmem (!%p156_p10), [#allocation2], %s321_s29 }
  0x11   : > { %s229_s7 = sshll.u32 (!%p156_p10), %s184_s6, 4  ;;  %s227_s16 = scalar_lea.hbm (!%p156_p10), %s584_s2, %s325_s5  ;;  %s230_s7 = int_to_ptr.vmem [resolvable:$true] %s229_s7 }
  0x12   : > { %s214_s18 = scalar_lea.sflag (!%p156_p10), [#allocation3], %s182_s28  ;;  %s385_s20 = scalar_lea.vmem (!%p156_p10), %s230_s7, 128 }
  0x13   : > { %p386_p12 = scmp.ne.s32.totalorder (!%p156_p10), %s230_s7, %s385_s20 }
  0x14   : > { %v463_v0 = vmov 0   ;;  %s186_s23 = scalar_select %p185_p11, %s453_s12, 1 }
  0x15   : > { %384 = vset.pattern.permute.xlu0 %v463_v0  ;;  %p387_p13 = pnand %p386_p12, %p520_p4 }
  0x16   : > { %s322_s24 = sshll.u32 %s186_s23, 3  ;;  %s197_s4 = scalar_lea.vmem %s583_s1, %s186_s23 }
  0x17   : > { %s191_s27 = scalar_lea.vmem %s582_s0, %s322_s24  ;;  %v323_v2 = vld [vmem:[%s197_s4] ss:$0 sm:$0xff]  ;;  %p388_p0 = pneg %p387_p13 }
  0x18   : > { %v198_v1 = vld [vmem:[%s191_s27] sm:$0xff]  ;;  %s464_s24 = smov [#allocation2]  }
  0x19   : > { %202 = vperm.xlu0 %384, %v198_v1   ;;  %s389_s23 = sshll.u32 %s464_s24, 4  ;;  %s390_s23 = int_to_ptr.vmem [resolvable:$false] %s389_s23 }
  0x1a   : > { %s391_s12 = scalar_lea.vmem %s390_s23, 256  ;;  %p392_p1 = scmp.lt.s32.totalorder %s230_s7, %s390_s23 }
  0x1b   : > { %p393_p2 = scmp.lt.s32.totalorder %s391_s12, %s385_s20 }
  0x1d   : > { %p394_p3 = por %p393_p2, %p392_p1 }
  0x1f   : > { %p395_p5 = pnand %p394_p3, %p388_p0 }
  0x94   : > { %v203_v3 = vpop.permute.xlu0 %202 }
  0x95   : > { %v211_v4 = vadd.f32 %v323_v2, %v203_v3 }
  0x97   : > { %212 = vst [vmem:[%s184_s6] sm:$0xff] %v211_v4 }
  0x98   : > { %398 = shalt.err (!%p395_p5)
}
  0x99   : > { %s399_s25 = scalar_lea.hbm %s227_s16, 128  ;;  %s403_s28 = scalar_lea.hbm %s584_s2, 256 }
  0x9a   : > { %p400_p6 = scmp.ne.s32.totalorder %s227_s16, %s399_s25  ;;  %p404_p10 = scmp.lt.s32.totalorder %s227_s16, %s584_s2 }
  0x9b   : > { %p405_p11 = scmp.lt.s32.totalorder %s403_s28, %s399_s25 }
  0x9c   : > { %p401_p7 = pnand %p400_p6, %p520_p4 }
  0x9d   : > { %p406_p12 = por %p405_p11, %p404_p10 }
  0x9e   : > { %p402_p9 = pneg %p401_p7 }
  0xa0   : > { %p407_p13 = pnand %p406_p12, %p402_p9 }
  0xa2   : > { %410 = shalt.err (!%p407_p13)
}
  0xa3   : > { %328 = dma.vmem_to_hbm [thread:$0]  (%p520_p4), %s230_s7, 128, %s227_s16, %s214_s18  }
  0xa4 PF: > { %p334_p0 = scmp.ge.s32.totalorder %s461_s14, 2  ;;  %s241_s3 = sand.u32 1, %s441_s9  }
  0xa5   : > { %s242_s4 = scalar_lea.sflag [#allocation3], %s241_s3 }
  0xa6   : > { %p331_p1 = pnand %p334_p0, %p527_p8 }
  0xa8   : > { %p332_p2 = pneg %p331_p1 }
  0xaa   : > { %436 = dma.done.wait (%p332_p2), %s242_s4, 128  }
  0xab   : > { %438 = vsyncadd (%p332_p2), %s242_s4, 4294967168  ;;  %s15_s14 = sadd.s32 1, %s461_s14   ;;  %s587_s9 = smov %s445_s10 }
  0xac   : > { %p12_p3 = scmp.ge.s32.totalorder %s15_s14, 4   ;;  %s588_s10 = smov %s449_s11 }
  0xad   : > { %s589_s11 = smov %s533_s22  ;;  %s590_s12 = smov %s457_s13 }
  0xae   : > { %s591_s13 = smov %s593_s17  ;;  %14 = sbr.rel (!%p12_p3) target bundleno = 4 (0x4), region = 66 }
  0xb3   :  { %247 = vsyncpa [#allocation3], 1 }
  0xb4   :  { %249 = vsyncpa [#allocation3 + $0x1], 1 }

</bundles_post_ra>
